<compile_context>
chip_gen: v5e
topology: v5e:2x2
jax: 0.10.0
libtpu: 0.0.40
codegen_flags: <defaults>
</compile_context>

<pallas_src>
import jax
import jax.numpy as jnp
from jax.experimental import pallas as pl
from jax.experimental.pallas import tpu as pltpu


def _pair(v):
    return tuple(v) if isinstance(v, (tuple, list)) else (v, v)


# ---------------------------------------------------------------------------
# Kernel factory (closure over static geometry / avg flag)
# ---------------------------------------------------------------------------
def _make_fold_kernel(kh, kw, Lh, Lw, rt, oh_list, rh_list, n_planes, avg):
    """Refs: a_ref, sw_ref, [inv_ref], o_ref_0..o_ref_{sh-1}, acc_0..acc_{sh-1}."""

    def kernel(*refs):
        i = 0
        a_ref = refs[i]; i += 1                      # (rt, kh*kw*Lh, Lw)
        sw_ref = refs[i]; i += 1                     # (kw*Lw, W) 0/1 scatter blocks
        inv_ref = None
        if avg:
            inv_ref = refs[i]; i += 1                # (sh, Hq, W) reciprocal of fold(ones)
        o_refs = refs[i:i + n_planes]                # each (rt, Hq, W)
        acc_refs = refs[i + n_planes:i + 2 * n_planes]   # each (rt, Hq, W) f32

        # zero the per-step accumulators (each grid step owns a fresh row block)
        for r in range(n_planes):
            acc_refs[r][...] = jnp.zeros_like(acc_refs[r])

        # fold: per kernel row ki, scatter columns along W with tiny 0/1 matmuls
        # (summed over kj in registers), then place the (rt, Lh, W) slab at its
        # strided row offset with one static sublane-slice accumulate.
        for ki in range(kh):
            t2 = None
            for kj in range(kw):
                blk = ki * kw + kj
                xb = a_ref[:, blk * Lh:(blk + 1) * Lh, :].reshape(rt * Lh, Lw)
                swk = sw_ref[kj * Lw:(kj + 1) * Lw, :]
                p = jnp.dot(xb, swk, preferred_element_type=jnp.float32)
                t2 = p if t2 is None else t2 + p           # (rt*Lh, W) f32
            t = t2.reshape(rt, Lh, -1)
            oh = oh_list[ki]
            acc_refs[rh_list[ki]][:, oh:oh + Lh, :] += t

        # finalize: optional avg divide (fused as a multiply), cast, store
        for r in range(n_planes):
            res = acc_refs[r][...]
            if avg:
                res = res * inv_ref[r]
            o_refs[r][...] = res.astype(o_refs[r].dtype)

    return kernel


# ---------------------------------------------------------------------------
# Wrapper: layout plumbing + tiny scatter-matrix construction + pallas_call
# ---------------------------------------------------------------------------
def col2im_pallas(x, output_size, kernel_size, stride, padding, dilation=1,
                  avg=False, input_tensorized=False, row_tile=256,
                  vmem_budget_bytes=20 * 1024 * 1024):
    if input_tensorized:
        x = x.reshape(x.shape[0], x.shape[1], x.shape[2] * x.shape[3])

    H, W = _pair(output_size)
    kh, kw = _pair(kernel_size)
    sh, sw = _pair(stride)
    ph, pw = _pair(padding)
    dh, dw = _pair(dilation)

    Lh = (H + 2 * ph - dh * (kh - 1) - 1) // sh + 1
    Lw = (W + 2 * pw - dw * (kw - 1) - 1) // sw + 1
    N, CK, L = x.shape
    assert CK % (kh * kw) == 0, f"channel dim {CK} not divisible by kh*kw={kh * kw}"
    assert L == Lh * Lw, f"expected L={Lh * Lw}, got {L}"
    C = CK // (kh * kw)
    NC = N * C

    # stride decomposition of the H scatter: h_pad = (li + oh_ki)*sh + rh_ki
    oh_list = [(ki * dh) // sh for ki in range(kh)]
    rh_list = [(ki * dh) % sh for ki in range(kh)]
    Hq = max(Lh + ((kh - 1) * dh) // sh, -(-(ph + H) // sh))   # rows per remainder plane

    cdt = x.dtype                       # compute dtype (bf16 input -> bf16 matmul path)
    out_dtype = x.dtype

    # tiny 0/1 W-scatter matrix, one (Lw, W) block per kernel column kj
    lj = jnp.arange(Lw)[None, :, None]
    kjv = jnp.arange(kw)[:, None, None]
    wv = jnp.arange(W)[None, None, :]
    Sw = ((lj * sw - pw + kjv * dw) == wv).astype(cdt).reshape(kw * Lw, W)

    # columns as (NC, kh*kw*Lh, Lw): pure leading-dim regrouping (no data movement)
    A = x.reshape(NC, kh * kw * Lh, Lw)
    inputs = [A, Sw]

    # avg divisor, pre-laid-out in the strided (sh, Hq, W) layout the kernel writes
    if avg:
        hh = jnp.arange(H)[None, :]
        kii = jnp.arange(kh)[:, None]
        numh = hh + ph - kii * dh
        ch = (((numh % sh) == 0) & (numh >= 0) & (numh // sh < Lh)).sum(0)   # (H,)
        ww = jnp.arange(W)[None, :]
        kjj = jnp.arange(kw)[:, None]
        numw = ww + pw - kjj * dw
        cw = (((numw % sw) == 0) & (numw >= 0) & (numw // sw < Lw)).sum(0)   # (W,)
        me = (ch[:, None] * cw[None, :]).astype(jnp.float32)
        me = jnp.where(me == 0, 1.0, me)
        inv_hw = 1.0 / me
        r = jnp.arange(sh)[:, None]
        q = jnp.arange(Hq)[None, :]
        h = q * sh + r - ph
        valid = (h >= 0) & (h < H)
        inv_int = jnp.where(valid[:, :, None],
                            inv_hw[jnp.clip(h, 0, H - 1)], 1.0)             # (sh, Hq, W)
        inputs.append(inv_int.astype(jnp.float32))

    # row-tile choice: >=2 grid steps (megacore on v7x) and bounded VMEM
    in_item = jnp.dtype(cdt).itemsize
    out_item = jnp.dtype(out_dtype).itemsize
    per_row = (2 * kh * kw * Lh * Lw * in_item            # A block, double-buffered
               + sh * Hq * W * (2 * out_item + 4))        # out blocks (x2) + f32 acc
    rt = max(1, min(row_tile, NC))
    if NC >= 2:
        rt = min(rt, -(-NC // 2))
    while rt > 1 and rt * per_row > vmem_budget_bytes:
        rt = max(1, rt // 2)
    grid = (pl.cdiv(NC, rt),)

    in_specs = [pl.BlockSpec((rt, kh * kw * Lh, Lw), lambda i: (i, 0, 0)),
                pl.BlockSpec((kw * Lw, W), lambda i: (0, 0))]
    if avg:
        in_specs.append(pl.BlockSpec((sh, Hq, W), lambda i: (0, 0, 0)))
    out_shape = tuple(jax.ShapeDtypeStruct((NC, Hq, W), out_dtype) for _ in range(sh))
    out_specs = tuple(pl.BlockSpec((rt, Hq, W), lambda i: (i, 0, 0)) for _ in range(sh))
    scratch = [pltpu.VMEM((rt, Hq, W), jnp.float32) for _ in range(sh)]

    kernel = _make_fold_kernel(kh, kw, Lh, Lw, rt, oh_list, rh_list, sh, avg)

    cost = pl.CostEstimate(
        flops=int(2 * NC * kh * kw * Lh * Lw * W),
        transcendentals=0,
        bytes_accessed=int(A.size * in_item + Sw.size * in_item
                           + sh * NC * Hq * W * out_item
                           + (sh * Hq * W * 4 if avg else 0)))

    outs = pl.pallas_call(
        kernel,
        out_shape=out_shape,
        grid_spec=pltpu.PrefetchScalarGridSpec(
            num_scalar_prefetch=0,
            grid=grid,
            in_specs=in_specs,
            out_specs=out_specs,
            scratch_shapes=scratch),
        compiler_params=pltpu.CompilerParams(
            dimension_semantics=("parallel",)),
        cost_estimate=cost,
    )(*inputs)

    if not isinstance(outs, (list, tuple)):
        outs = (outs,)
    # un-interleave the sh remainder planes back to padded rows, drop padding
    full = jnp.stack(outs, axis=2).reshape(NC, Hq * sh, W)
    out = full[:, ph:ph + H, :].reshape(N, C, H, W)
    return out


# ---------------------------------------------------------------------------
# Pure-JAX reference of F.fold for verification
# ---------------------------------------------------------------------------
def fold_ref(x, output_size, kernel_size, stride, padding, dilation=1, avg=False):
    H, W = _pair(output_size)
    kh, kw = _pair(kernel_size)
    sh, sw = _pair(stride)
    ph, pw = _pair(padding)
    dh, dw = _pair(dilation)
    Lh = (H + 2 * ph - dh * (kh - 1) - 1) // sh + 1
    Lw = (W + 2 * pw - dw * (kw - 1) - 1) // sw + 1
    N, CK, L = x.shape
    C = CK // (kh * kw)
    xr = x.reshape(N, C, kh, kw, Lh, Lw)
    out = jnp.zeros((N, C, H + 2 * ph, W + 2 * pw), x.dtype)
    cnt = jnp.zeros((1, 1, H + 2 * ph, W + 2 * pw), x.dtype)
    for ki in range(kh):
        for kj in range(kw):
            hs, ws = ki * dh, kj * dw
            out = out.at[:, :, hs:hs + Lh * sh:sh,
                         ws:ws + Lw * sw:sw].add(xr[:, :, ki, kj])
            cnt = cnt.at[:, :, hs:hs + Lh * sh:sh,
                         ws:ws + Lw * sw:sw].add(1.0)
    out = out[:, :, ph:ph + H, pw:pw + W]
    if avg:
        c = cnt[:, :, ph:ph + H, pw:pw + W]
        out = out / jnp.where(c == 0, 1.0, c)
    return out


if __name__ == "__main__":
    # Config consistent with the module's forward:
    # output (N=2, C=4, H=16, W=16), kernel 3x3, stride 2, padding 1, dilation 1
    N, C, H, W = 2, 4, 16, 16
    kh, kw, s, p, d = 3, 3, 2, 1, 1
    Lh = (H + 2 * p - d * (kh - 1) - 1) // s + 1
    Lw = (W + 2 * p - d * (kw - 1) - 1) // s + 1
    L = Lh * Lw                                       # 8 * 8 = 64

    key = jax.random.PRNGKey(0)
    x = jax.random.normal(key, (N, C * kh * kw, L), dtype=jnp.float32)

    # jit with static config so the tiny scatter-matrix construction is cached
    fold = jax.jit(col2im_pallas,
                   static_argnames=("output_size", "kernel_size", "stride",
                                    "padding", "dilation", "avg",
                                    "input_tensorized", "row_tile",
                                    "vmem_budget_bytes"))

    # sum path (avg=False): no divisor stream, no extra multiply
    out = jax.block_until_ready(fold(x, output_size=(H, W), kernel_size=(kh, kw),
                                     stride=s, padding=p, dilation=d, avg=False))
    ref = fold_ref(x, (H, W), (kh, kw), s, p, d, avg=False)
    assert out.shape == (N, C, H, W) and out.dtype == x.dtype
    assert jnp.allclose(out, ref, atol=1e-5, rtol=1e-5)

    # avg path: divide by fold(ones) with zeros clamped to 1 (fused in-kernel)
    out_avg = jax.block_until_ready(fold(x, output_size=(H, W), kernel_size=(kh, kw),
                                         stride=s, padding=p, dilation=d, avg=True))
    ref_avg = fold_ref(x, (H, W), (kh, kw), s, p, d, avg=True)
    assert jnp.allclose(out_avg, ref_avg, atol=1e-5, rtol=1e-5)

    # bf16 input path: half the HBM traffic on A/out, f32 accumulation in-kernel
    xb = x.astype(jnp.bfloat16)
    out_bf = jax.block_until_ready(fold(xb, output_size=(H, W), kernel_size=(kh, kw),
                                        stride=s, padding=p, dilation=d, avg=False))
    ref_bf = fold_ref(xb.astype(jnp.float32), (H, W), (kh, kw), s, p, d, avg=False)
    assert out_bf.dtype == jnp.bfloat16
    assert jnp.allclose(out_bf.astype(jnp.float32), ref_bf, atol=2e-2, rtol=2e-2)

    print("KERNEL_OK")
</pallas_src>

<mosaic_0001>
module attributes {stable_mosaic.version = 11 : i64} {
  func.func @kernel(%arg0: i32, %arg1: memref<4x72x8xf32, #tpu.memory_space<vmem>>, %arg2: memref<24x16xf32, #tpu.memory_space<vmem>>, %arg3: memref<4x9x16xf32, #tpu.memory_space<vmem>>, %arg4: memref<4x9x16xf32, #tpu.memory_space<vmem>>, %arg5: memref<4x9x16xf32, #tpu.memory_space<vmem>>, %arg6: memref<4x9x16xf32, #tpu.memory_space<vmem>>) attributes {dimension_semantics = [#tpu.dimension_semantics<parallel>], iteration_bounds = array<i64: 2>, scalar_prefetch = 0 : i64, scratch_operands = 2 : i64, tpu.core_type = #tpu.core_type<tc>, window_params = [{transform_indices = @transform_0, window_bounds = array<i64: 4, 72, 8>}, {pipeline_mode = #tpu.pipeline_mode<synchronous>, transform_indices = @transform_1, window_bounds = array<i64: 24, 16>}, {transform_indices = @transform_2, window_bounds = array<i64: 4, 9, 16>}, {transform_indices = @transform_3, window_bounds = array<i64: 4, 9, 16>}]} {
    %cst = arith.constant 0.000000e+00 : f32
    %0 = vector.broadcast %cst : f32 to vector<4x9x16xf32>
    %c0 = arith.constant 0 : index
    %c0_0 = arith.constant 0 : index
    %c0_1 = arith.constant 0 : index
    %1 = vector.load %arg5[%c0, %c0_0, %c0_1] : memref<4x9x16xf32, #tpu.memory_space<vmem>>, vector<4x9x16xf32>
    tpu.vector_store %arg5[%c0, %c0_0, %c0_1], %0 {strides = array<i32>} : memref<4x9x16xf32, #tpu.memory_space<vmem>>, vector<4x9x16xf32>,
    %cst_2 = arith.constant 0.000000e+00 : f32
    %2 = vector.broadcast %cst_2 : f32 to vector<4x9x16xf32>
    %c0_3 = arith.constant 0 : index
    %c0_4 = arith.constant 0 : index
    %c0_5 = arith.constant 0 : index
    %3 = vector.load %arg6[%c0_3, %c0_4, %c0_5] : memref<4x9x16xf32, #tpu.memory_space<vmem>>, vector<4x9x16xf32>
    tpu.vector_store %arg6[%c0_3, %c0_4, %c0_5], %2 {strides = array<i32>} : memref<4x9x16xf32, #tpu.memory_space<vmem>>, vector<4x9x16xf32>,
    %c0_6 = arith.constant 0 : index
    %c0_7 = arith.constant 0 : index
    %c0_8 = arith.constant 0 : index
    %4 = vector.load %arg1[%c0_6, %c0_7, %c0_8] : memref<4x72x8xf32, #tpu.memory_space<vmem>>, vector<4x8x8xf32>
    %5 = vector.shape_cast %4 : vector<4x8x8xf32> to vector<32x8xf32>
    %c0_9 = arith.constant 0 : index
    %c0_10 = arith.constant 0 : index
    %6 = vector.load %arg2[%c0_9, %c0_10] : memref<24x16xf32, #tpu.memory_space<vmem>>, vector<8x16xf32>
    %cst_11 = arith.constant dense<0.000000e+00> : vector<32x16xf32>
    %7 = tpu.matmul %5, %6, %cst_11 {dimension_numbers = #tpu.dot_dimension_numbers<[1], [0], [0], [1], [0, 0, 1, 1], [], []>} : vector<32x8xf32>, vector<8x16xf32>, vector<32x16xf32> -> vector<32x16xf32>
    %c0_12 = arith.constant 0 : index
    %c8 = arith.constant 8 : index
    %c0_13 = arith.constant 0 : index
    %8 = vector.load %arg1[%c0_12, %c8, %c0_13] : memref<4x72x8xf32, #tpu.memory_space<vmem>>, vector<4x8x8xf32>
    %9 = vector.shape_cast %8 : vector<4x8x8xf32> to vector<32x8xf32>
    %c8_14 = arith.constant 8 : index
    %c0_15 = arith.constant 0 : index
    %10 = vector.load %arg2[%c8_14, %c0_15] : memref<24x16xf32, #tpu.memory_space<vmem>>, vector<8x16xf32>
    %cst_16 = arith.constant dense<0.000000e+00> : vector<32x16xf32>
    %11 = tpu.matmul %9, %10, %cst_16 {dimension_numbers = #tpu.dot_dimension_numbers<[1], [0], [0], [1], [0, 0, 1, 1], [], []>} : vector<32x8xf32>, vector<8x16xf32>, vector<32x16xf32> -> vector<32x16xf32>
    %12 = arith.addf %7, %11 : vector<32x16xf32>
    %c0_17 = arith.constant 0 : index
    %c16 = arith.constant 16 : index
    %c0_18 = arith.constant 0 : index
    %13 = vector.load %arg1[%c0_17, %c16, %c0_18] : memref<4x72x8xf32, #tpu.memory_space<vmem>>, vector<4x8x8xf32>
    %14 = vector.shape_cast %13 : vector<4x8x8xf32> to vector<32x8xf32>
    %c16_19 = arith.constant 16 : index
    %c0_20 = arith.constant 0 : index
    %15 = vector.load %arg2[%c16_19, %c0_20] : memref<24x16xf32, #tpu.memory_space<vmem>>, vector<8x16xf32>
    %cst_21 = arith.constant dense<0.000000e+00> : vector<32x16xf32>
    %16 = tpu.matmul %14, %15, %cst_21 {dimension_numbers = #tpu.dot_dimension_numbers<[1], [0], [0], [1], [0, 0, 1, 1], [], []>} : vector<32x8xf32>, vector<8x16xf32>, vector<32x16xf32> -> vector<32x16xf32>
    %17 = arith.addf %12, %16 : vector<32x16xf32>
    %18 = vector.shape_cast %17 : vector<32x16xf32> to vector<4x8x16xf32>
    %c0_22 = arith.constant 0 : index
    %c0_23 = arith.constant 0 : index
    %c0_24 = arith.constant 0 : index
    %19 = vector.load %arg5[%c0_22, %c0_23, %c0_24] : memref<4x9x16xf32, #tpu.memory_space<vmem>>, vector<4x8x16xf32>
    %20 = arith.addf %19, %18 : vector<4x8x16xf32>
    %c0_25 = arith.constant 0 : index
    %c0_26 = arith.constant 0 : index
    %c0_27 = arith.constant 0 : index
    %21 = vector.load %arg5[%c0_25, %c0_26, %c0_27] : memref<4x9x16xf32, #tpu.memory_space<vmem>>, vector<4x8x16xf32>
    tpu.vector_store %arg5[%c0_25, %c0_26, %c0_27], %20 {strides = array<i32>} : memref<4x9x16xf32, #tpu.memory_space<vmem>>, vector<4x8x16xf32>,
    %c0_28 = arith.constant 0 : index
    %c24 = arith.constant 24 : index
    %c0_29 = arith.constant 0 : index
    %22 = vector.load %arg1[%c0_28, %c24, %c0_29] : memref<4x72x8xf32, #tpu.memory_space<vmem>>, vector<4x8x8xf32>
    %23 = vector.shape_cast %22 : vector<4x8x8xf32> to vector<32x8xf32>
    %c0_30 = arith.constant 0 : index
    %c0_31 = arith.constant 0 : index
    %24 = vector.load %arg2[%c0_30, %c0_31] : memref<24x16xf32, #tpu.memory_space<vmem>>, vector<8x16xf32>
    %cst_32 = arith.constant dense<0.000000e+00> : vector<32x16xf32>
    %25 = tpu.matmul %23, %24, %cst_32 {dimension_numbers = #tpu.dot_dimension_numbers<[1], [0], [0], [1], [0, 0, 1, 1], [], []>} : vector<32x8xf32>, vector<8x16xf32>, vector<32x16xf32> -> vector<32x16xf32>
    %c0_33 = arith.constant 0 : index
    %c32 = arith.constant 32 : index
    %c0_34 = arith.constant 0 : index
    %26 = vector.load %arg1[%c0_33, %c32, %c0_34] : memref<4x72x8xf32, #tpu.memory_space<vmem>>, vector<4x8x8xf32>
    %27 = vector.shape_cast %26 : vector<4x8x8xf32> to vector<32x8xf32>
    %c8_35 = arith.constant 8 : index
    %c0_36 = arith.constant 0 : index
    %28 = vector.load %arg2[%c8_35, %c0_36] : memref<24x16xf32, #tpu.memory_space<vmem>>, vector<8x16xf32>
    %cst_37 = arith.constant dense<0.000000e+00> : vector<32x16xf32>
    %29 = tpu.matmul %27, %28, %cst_37 {dimension_numbers = #tpu.dot_dimension_numbers<[1], [0], [0], [1], [0, 0, 1, 1], [], []>} : vector<32x8xf32>, vector<8x16xf32>, vector<32x16xf32> -> vector<32x16xf32>
    %30 = arith.addf %25, %29 : vector<32x16xf32>
    %c0_38 = arith.constant 0 : index
    %c40 = arith.constant 40 : index
    %c0_39 = arith.constant 0 : index
    %31 = vector.load %arg1[%c0_38, %c40, %c0_39] : memref<4x72x8xf32, #tpu.memory_space<vmem>>, vector<4x8x8xf32>
    %32 = vector.shape_cast %31 : vector<4x8x8xf32> to vector<32x8xf32>
    %c16_40 = arith.constant 16 : index
    %c0_41 = arith.constant 0 : index
    %33 = vector.load %arg2[%c16_40, %c0_41] : memref<24x16xf32, #tpu.memory_space<vmem>>, vector<8x16xf32>
    %cst_42 = arith.constant dense<0.000000e+00> : vector<32x16xf32>
    %34 = tpu.matmul %32, %33, %cst_42 {dimension_numbers = #tpu.dot_dimension_numbers<[1], [0], [0], [1], [0, 0, 1, 1], [], []>} : vector<32x8xf32>, vector<8x16xf32>, vector<32x16xf32> -> vector<32x16xf32>
    %35 = arith.addf %30, %34 : vector<32x16xf32>
    %36 = vector.shape_cast %35 : vector<32x16xf32> to vector<4x8x16xf32>
    %c0_43 = arith.constant 0 : index
    %c0_44 = arith.constant 0 : index
    %c0_45 = arith.constant 0 : index
    %37 = vector.load %arg6[%c0_43, %c0_44, %c0_45] : memref<4x9x16xf32, #tpu.memory_space<vmem>>, vector<4x8x16xf32>
    %38 = arith.addf %37, %36 : vector<4x8x16xf32>
    %c0_46 = arith.constant 0 : index
    %c0_47 = arith.constant 0 : index
    %c0_48 = arith.constant 0 : index
    %39 = vector.load %arg6[%c0_46, %c0_47, %c0_48] : memref<4x9x16xf32, #tpu.memory_space<vmem>>, vector<4x8x16xf32>
    tpu.vector_store %arg6[%c0_46, %c0_47, %c0_48], %38 {strides = array<i32>} : memref<4x9x16xf32, #tpu.memory_space<vmem>>, vector<4x8x16xf32>,
    %c0_49 = arith.constant 0 : index
    %c48 = arith.constant 48 : index
    %c0_50 = arith.constant 0 : index
    %40 = vector.load %arg1[%c0_49, %c48, %c0_50] : memref<4x72x8xf32, #tpu.memory_space<vmem>>, vector<4x8x8xf32>
    %41 = vector.shape_cast %40 : vector<4x8x8xf32> to vector<32x8xf32>
    %c0_51 = arith.constant 0 : index
    %c0_52 = arith.constant 0 : index
    %42 = vector.load %arg2[%c0_51, %c0_52] : memref<24x16xf32, #tpu.memory_space<vmem>>, vector<8x16xf32>
    %cst_53 = arith.constant dense<0.000000e+00> : vector<32x16xf32>
    %43 = tpu.matmul %41, %42, %cst_53 {dimension_numbers = #tpu.dot_dimension_numbers<[1], [0], [0], [1], [0, 0, 1, 1], [], []>} : vector<32x8xf32>, vector<8x16xf32>, vector<32x16xf32> -> vector<32x16xf32>
    %c0_54 = arith.constant 0 : index
    %c56 = arith.constant 56 : index
    %c0_55 = arith.constant 0 : index
    %44 = vector.load %arg1[%c0_54, %c56, %c0_55] : memref<4x72x8xf32, #tpu.memory_space<vmem>>, vector<4x8x8xf32>
    %45 = vector.shape_cast %44 : vector<4x8x8xf32> to vector<32x8xf32>
    %c8_56 = arith.constant 8 : index
    %c0_57 = arith.constant 0 : index
    %46 = vector.load %arg2[%c8_56, %c0_57] : memref<24x16xf32, #tpu.memory_space<vmem>>, vector<8x16xf32>
    %cst_58 = arith.constant dense<0.000000e+00> : vector<32x16xf32>
    %47 = tpu.matmul %45, %46, %cst_58 {dimension_numbers = #tpu.dot_dimension_numbers<[1], [0], [0], [1], [0, 0, 1, 1], [], []>} : vector<32x8xf32>, vector<8x16xf32>, vector<32x16xf32> -> vector<32x16xf32>
    %48 = arith.addf %43, %47 : vector<32x16xf32>
    %c0_59 = arith.constant 0 : index
    %c64 = arith.constant 64 : index
    %c0_60 = arith.constant 0 : index
    %49 = vector.load %arg1[%c0_59, %c64, %c0_60] : memref<4x72x8xf32, #tpu.memory_space<vmem>>, vector<4x8x8xf32>
    %50 = vector.shape_cast %49 : vector<4x8x8xf32> to vector<32x8xf32>
    %c16_61 = arith.constant 16 : index
    %c0_62 = arith.constant 0 : index
    %51 = vector.load %arg2[%c16_61, %c0_62] : memref<24x16xf32, #tpu.memory_space<vmem>>, vector<8x16xf32>
    %cst_63 = arith.constant dense<0.000000e+00> : vector<32x16xf32>
    %52 = tpu.matmul %50, %51, %cst_63 {dimension_numbers = #tpu.dot_dimension_numbers<[1], [0], [0], [1], [0, 0, 1, 1], [], []>} : vector<32x8xf32>, vector<8x16xf32>, vector<32x16xf32> -> vector<32x16xf32>
    %53 = arith.addf %48, %52 : vector<32x16xf32>
    %54 = vector.shape_cast %53 : vector<32x16xf32> to vector<4x8x16xf32>
    %c0_64 = arith.constant 0 : index
    %c1 = arith.constant 1 : index
    %c0_65 = arith.constant 0 : index
    %55 = vector.load %arg5[%c0_64, %c1, %c0_65] : memref<4x9x16xf32, #tpu.memory_space<vmem>>, vector<4x8x16xf32>
    %56 = arith.addf %55, %54 : vector<4x8x16xf32>
    %c0_66 = arith.constant 0 : index
    %c1_67 = arith.constant 1 : index
    %c0_68 = arith.constant 0 : index
    %57 = vector.load %arg5[%c0_66, %c1_67, %c0_68] : memref<4x9x16xf32, #tpu.memory_space<vmem>>, vector<4x8x16xf32>
    tpu.vector_store %arg5[%c0_66, %c1_67, %c0_68], %56 {strides = array<i32>} : memref<4x9x16xf32, #tpu.memory_space<vmem>>, vector<4x8x16xf32>,
    %c0_69 = arith.constant 0 : index
    %c0_70 = arith.constant 0 : index
    %c0_71 = arith.constant 0 : index
    %58 = vector.load %arg5[%c0_69, %c0_70, %c0_71] : memref<4x9x16xf32, #tpu.memory_space<vmem>>, vector<4x9x16xf32>
    %c0_72 = arith.constant 0 : index
    %c0_73 = arith.constant 0 : index
    %c0_74 = arith.constant 0 : index
    %59 = vector.load %arg3[%c0_72, %c0_73, %c0_74] : memref<4x9x16xf32, #tpu.memory_space<vmem>>, vector<4x9x16xf32>
    tpu.vector_store %arg3[%c0_72, %c0_73, %c0_74], %58 {strides = array<i32>} : memref<4x9x16xf32, #tpu.memory_space<vmem>>, vector<4x9x16xf32>,
    %c0_75 = arith.constant 0 : index
    %c0_76 = arith.constant 0 : index
    %c0_77 = arith.constant 0 : index
    %60 = vector.load %arg6[%c0_75, %c0_76, %c0_77] : memref<4x9x16xf32, #tpu.memory_space<vmem>>, vector<4x9x16xf32>
    %c0_78 = arith.constant 0 : index
    %c0_79 = arith.constant 0 : index
    %c0_80 = arith.constant 0 : index
    %61 = vector.load %arg4[%c0_78, %c0_79, %c0_80] : memref<4x9x16xf32, #tpu.memory_space<vmem>>, vector<4x9x16xf32>
    tpu.vector_store %arg4[%c0_78, %c0_79, %c0_80], %60 {strides = array<i32>} : memref<4x9x16xf32, #tpu.memory_space<vmem>>, vector<4x9x16xf32>,
    return
  }
  func.func @transform_0(%arg0: i32) -> (i32, i32, i32) {
    %c0_i32 = arith.constant 0 : i32
    %c0_i32_0 = arith.constant 0 : i32
    %c0_i32_1 = arith.constant 0 : i32
    return %arg0, %c0_i32, %c0_i32_0 : i32, i32, i32
  }
  func.func @transform_1(%arg0: i32) -> (i32, i32) {
    %c0_i32 = arith.constant 0 : i32
    %c0_i32_0 = arith.constant 0 : i32
    %c0_i32_1 = arith.constant 0 : i32
    return %c0_i32, %c0_i32_0 : i32, i32
  }
  func.func @transform_2(%arg0: i32) -> (i32, i32, i32) {
    %c0_i32 = arith.constant 0 : i32
    %c0_i32_0 = arith.constant 0 : i32
    %c0_i32_1 = arith.constant 0 : i32
    return %arg0, %c0_i32, %c0_i32_0 : i32, i32, i32
  }
  func.func @transform_3(%arg0: i32) -> (i32, i32, i32) {
    %c0_i32 = arith.constant 0 : i32
    %c0_i32_0 = arith.constant 0 : i32
    %c0_i32_1 = arith.constant 0 : i32
    return %arg0, %c0_i32, %c0_i32_0 : i32, i32, i32
  }
}

</mosaic_0001>

<bundles_post_ra>
// kernel: col2im_pallas.1
= control target key start
LH: loop header
LB: loop body
LE: loop exit
PB: predicated region body
PF: predicated region fallthrough
CT: control target
= control target key end

     0   :  { %s897_s12 = smov 0   ;;  %s1072_s0 = inlined_call_operand.vmem [shape: f32[8,72,8], index: 0, kind: input, shape index: {}]   ;;  %s1073_s1 = inlined_call_operand.vmem [shape: f32[24,16], index: 1, kind: input, shape index: {}]   ;;  %s1074_s2 = inlined_call_operand.vmem [shape: f32[8,9,16], index: 2, kind: output, shape index: {0}]   ;;  %s1075_s3 = inlined_call_operand.vmem [shape: f32[8,9,16], index: 3, kind: output, shape index: {1}]  }
   0x1 LB: > { %s802_s13 = sadd.s32 4294967295, %s874_s12   ;;  %p806_p0 = scmp.ge.s32.totalorder %s874_s12, 1  ;;  %s874_s12 = sphi %s897_s12, %s14_s12  }
   0x2   : > { %p142_p1 = scmp.lt.s32.totalorder %s874_s12, 3 }
   0x4   : > { %p143_p2 = pnand %p806_p0, %p142_p1 }
   0x5   : > { %s807_s16 = sshll.u32 (!%p143_p2), %s802_s13, 2 }
   0x6   : > { %146 = sbr.rel (%p143_p2) target bundleno = 232 (0xe8), region = 28  ;;  %p175_p3 = scmp.lt.s32.totalorder (!%p143_p2), %s807_s16, 7 }
   0xb   : > { %v222_v0 = vld [vmem:[%s1073_s1 + $0x8] sm:$0xff]  ;;  %v310_v1 = vld [vmem:[%s1073_s1 + $0x10] sm:$0xff]  ;;  %v217_v2 = vld [vmem:[%s1073_s1] sm:$0xff]  ;;  %s1077_s16 = smov (!%p175_p3, %s807_s16), 7  ;;  %vm223_vm0 = vcmask 64512   ;;  %vm195_vm1 = vcmask 130048  }
   0xc   : > { %855 = vmatpush.msra.mxu1 %v222_v0  ;;  %856 = vmatpush.msra.mxu2 %v222_v0  ;;  %s858_s21 = smul.u32 72, %s1077_s16  ;;  %v876_v39 = vmov 0.0   ;;  %vm197_vm2 = vcmask 122880   ;;  %s853_s25 = sshll.u32 %s1077_s16, 4 }
   0xd   : > { %857 = vmatpush.msra.mxu3 %v222_v0  ;;  %251 = vmatpush.msra.mxu0 %v222_v0  ;;  %196 = vst.msk [vmem:[#allocation2] sm:$0xff] %vm195_vm1, %v876_v39  ;;  %s1017_s28 = scalar_lea.vmem %s1075_s3, %s853_s25  ;;  %s1040_s4 = scalar_lea.vmem %s1074_s2, %s853_s25 }
   0xe   : > { %338 = vmatpush.msrb.mxu2 %v310_v1  ;;  %292 = vmatpush.msrb.mxu1 %v217_v2  ;;  %s920_s24 = scalar_lea.vmem %s1072_s0, %s858_s21  ;;  %199 = vst.msk [vmem:[#allocation2 + $0x10] sm:$0xff] %vm195_vm1, %v876_v39 }
   0xf   : > { %405 = vmatpush.msrb.mxu3 %v222_v0  ;;  %446 = vmatpush.msrb.mxu0 %v217_v2  ;;  %v219_v3 = vld [vmem:[%s920_s24 + $0x50] sm:$0xff]  ;;  %v220_v4 = vld [vmem:[%s920_s24 + $0x98] sm:$0xff]  ;;  %v221_v5 = vld [vmem:[%s920_s24 + $0xe0] sm:$0xff]  ;;  %201 = vst.msk [vmem:[#allocation2 + $0x20] sm:$0xff] %vm195_vm1, %v876_v39 }
  0x10   : > { %816 = vmatmul.msk.f32.vlgmr.msra.gmra.mxu1 %vm223_vm0, %v219_v3  ;;  %817 = vmatmul.msk.f32.vlgmr.msra.gmra.mxu2 %vm223_vm0, %v220_v4  ;;  %v218_v6 = vld [vmem:[%s920_s24 + $0x8] sm:$0xff]  ;;  %v213_v7 = vld [vmem:[%s920_s24] sm:$0xff]  ;;  %v306_v8 = vld [vmem:[%s920_s24 + $0x10] sm:$0xff]  ;;  %203 = vst.msk [vmem:[#allocation2 + $0x30] sm:$0xff] %vm195_vm1, %v876_v39 }
  0x11   : > { %818 = vmatmul.msk.f32.vlgmr.msra.gmra.mxu3 %vm223_vm0, %v221_v5  ;;  %815 = vmatmul.msk.f32.vlgmr.msra.gmra.mxu0 %vm223_vm0, %v218_v6  ;;  %v373_v9 = vld [vmem:[%s920_s24 + $0x20] sm:$0xff]  ;;  %v368_v10 = vld [vmem:[%s920_s24 + $0x18] sm:$0xff]  ;;  %v214_v11 = vld [vmem:[%s920_s24 + $0x48] sm:$0xff]  ;;  %205 = vst.msk [vmem:[#allocation3] sm:$0xff] %vm195_vm1, %v876_v39 }
  0x12   : > { %559 = vmatpush.msra.mxu2 %v222_v0  ;;  %600 = vmatpush.msra.mxu3 %v217_v2  ;;  %v307_v12 = vld [vmem:[%s920_s24 + $0x58] sm:$0xff]  ;;  %v374_v13 = vld [vmem:[%s920_s24 + $0x68] sm:$0xff]  ;;  %v369_v14 = vld [vmem:[%s920_s24 + $0x60] sm:$0xff]  ;;  %207 = vst.msk [vmem:[#allocation3 + $0x10] sm:$0xff] %vm195_vm1, %v876_v39 }
  0x13   : > { %492 = vmatpush.msra.mxu1 %v310_v1  ;;  %646 = vmatpush.msra.mxu0 %v310_v1  ;;  %v215_v15 = vld [vmem:[%s920_s24 + $0x90] sm:$0xff]  ;;  %v308_v16 = vld [vmem:[%s920_s24 + $0xa0] sm:$0xff]  ;;  %v370_v18 = vld [vmem:[%s920_s24 + $0xa8] sm:$0xff]  ;;  %209 = vst.msk [vmem:[#allocation3 + $0x20] sm:$0xff] %vm195_vm1, %v876_v39 }
  0x14   : > { %v375_v17 = vld [vmem:[%s920_s24 + $0xb0] sm:$0xff]  ;;  %v216_v19 = vld [vmem:[%s920_s24 + $0xd8] sm:$0xff]  ;;  %v309_v20 = vld [vmem:[%s920_s24 + $0xe8] sm:$0xff]  ;;  %211 = vst.msk [vmem:[#allocation3 + $0x30] sm:$0xff] %vm195_vm1, %v876_v39 }
  0x15   : > { %v376_v21 = vld [vmem:[%s920_s24 + $0xf8] sm:$0xff]  ;;  %v371_v22 = vld [vmem:[%s920_s24 + $0xf0] sm:$0xff]  ;;  %v460_v23 = vld [vmem:[%s920_s24 + $0x28] sm:$0xff]  ;;  %206 = vst.msk [vmem:[#allocation3 + $0x8] sm:$0x1] %vm197_vm2, %v876_v39 }
  0x16   : > { %v527_v24 = vld [vmem:[%s920_s24 + $0x38] sm:$0xff]  ;;  %v522_v25 = vld [vmem:[%s920_s24 + $0x30] sm:$0xff]  ;;  %v614_v26 = vld [vmem:[%s920_s24 + $0x40] sm:$0xff]  ;;  %208 = vst.msk [vmem:[#allocation3 + $0x18] sm:$0x1] %vm197_vm2, %v876_v39 }
  0x17   : > { %v461_v27 = vld [vmem:[%s920_s24 + $0x70] sm:$0xff]  ;;  %v528_v28 = vld [vmem:[%s920_s24 + $0x80] sm:$0xff]  ;;  %v523_v29 = vld [vmem:[%s920_s24 + $0x78] sm:$0xff]  ;;  %210 = vst.msk [vmem:[#allocation3 + $0x28] sm:$0x1] %vm197_vm2, %v876_v39 }
  0x18   : > { %819 = vmatmul.msk.f32.vlgmr.msrb.gmra.mxu1 %vm223_vm0, %v213_v7  ;;  %823 = vmatmul.msk.f32.vlgmr.msrb.gmra.mxu2 %vm223_vm0, %v306_v8  ;;  %v615_v30 = vld [vmem:[%s920_s24 + $0x88] sm:$0xff]  ;;  %v462_v31 = vld [vmem:[%s920_s24 + $0xb8] sm:$0xff]  ;;  %v524_v33 = vld [vmem:[%s920_s24 + $0xc0] sm:$0xff]  ;;  %212 = vst.msk [vmem:[#allocation3 + $0x38] sm:$0x1] %vm197_vm2, %v876_v39 }
  0x19   : > { %827 = vmatmul.msk.f32.vlgmr.msrb.gmra.mxu3 %vm223_vm0, %v373_v9  ;;  %831 = vmatmul.msk.f32.vlgmr.msrb.gmra.mxu0 %vm223_vm0, %v368_v10  ;;  %v529_v32 = vld [vmem:[%s920_s24 + $0xc8] sm:$0xff]  ;;  %v616_v34 = vld [vmem:[%s920_s24 + $0xd0] sm:$0xff]  ;;  %v463_v35 = vld [vmem:[%s920_s24 + $0x100] sm:$0xff]  ;;  %198 = vst.msk [vmem:[#allocation2 + $0x8] sm:$0x1] %vm197_vm2, %v876_v39 }
  0x1a   : > { %v530_v36 = vld [vmem:[%s920_s24 + $0x110] sm:$0xff]  ;;  %v525_v37 = vld [vmem:[%s920_s24 + $0x108] sm:$0xff]  ;;  %v617_v38 = vld [vmem:[%s920_s24 + $0x118] sm:$0xff]  ;;  %200 = vst.msk [vmem:[#allocation2 + $0x18] sm:$0x1] %vm197_vm2, %v876_v39 }
  0x1b   : > { %202 = vst.msk [vmem:[#allocation2 + $0x28] sm:$0x1] %vm197_vm2, %v876_v39  ;;  %v356_v48 = vld [vmem:[#allocation2] sm:$0xff]  ;;  %v357_v60 = vld [vmem:[#allocation2 + $0x10] sm:$0xff] }
  0x1c   : > { %204 = vst.msk [vmem:[#allocation2 + $0x38] sm:$0x1] %vm197_vm2, %v876_v39  ;;  %v693_v54 = vld [vmem:[#allocation3 + $0x8] sm:$0x1]  ;;  %v358_v4 = vld [vmem:[#allocation2 + $0x20] sm:$0xff] }
  0x1d   : > { %v695_v55 = vld [vmem:[#allocation3 + $0x18] sm:$0x1]  ;;  %701 = vst.msk [vmem:[%s1017_s28 + $0x8] sm:$0x1] %vm197_vm2, %v693_v54 }
  0x1e   : > { %v697_v56 = vld [vmem:[#allocation3 + $0x28] sm:$0x1]  ;;  %703 = vst.msk [vmem:[%s1017_s28 + $0x18] sm:$0x1] %vm197_vm2, %v695_v55  ;;  %v513_v55 = vld [vmem:[#allocation3 + $0x30] sm:$0xff] }
  0x1f   : > { %v699_v58 = vld [vmem:[#allocation3 + $0x38] sm:$0x1]  ;;  %705 = vst.msk [vmem:[%s1017_s28 + $0x28] sm:$0x1] %vm197_vm2, %v697_v56 }
  0x20   : > { %820 = vmatmul.msk.f32.gmra.mxu1 %vm223_vm0, %v214_v11  ;;  %824 = vmatmul.msk.f32.gmra.mxu2 %vm223_vm0, %v307_v12  ;;  %707 = vst.msk [vmem:[%s1017_s28 + $0x38] sm:$0x1] %vm197_vm2, %v699_v58  ;;  %v359_v12 = vld [vmem:[#allocation2 + $0x30] sm:$0xff] }
  0x21   : > { %828 = vmatmul.msk.f32.gmra.mxu3 %vm223_vm0, %v374_v13  ;;  %832 = vmatmul.msk.f32.gmra.mxu0 %vm223_vm0, %v369_v14 }
  0x28   : > { %821 = vmatmul.msk.f32.gmra.mxu1 %vm223_vm0, %v215_v15  ;;  %825 = vmatmul.msk.f32.gmra.mxu2 %vm223_vm0, %v308_v16 }
  0x29   : > { %829 = vmatmul.msk.f32.gmra.mxu3 %vm223_vm0, %v375_v17  ;;  %833 = vmatmul.msk.f32.gmra.mxu0 %vm223_vm0, %v370_v18  ;;  %v510_v17 = vld [vmem:[#allocation3] sm:$0xff] }
  0x30   : > { %822 = vmatmul.msk.f32.gmra.mxu1 %vm223_vm0, %v216_v19  ;;  %826 = vmatmul.msk.f32.gmra.mxu2 %vm223_vm0, %v309_v20 }
  0x31   : > { %830 = vmatmul.msk.f32.gmra.mxu3 %vm223_vm0, %v376_v21  ;;  %834 = vmatmul.msk.f32.gmra.mxu0 %vm223_vm0, %v371_v22 }
  0x38   : > { %835 = vmatmul.msk.f32.vlgmr.msra.gmra.mxu1 %vm223_vm0, %v460_v23  ;;  %839 = vmatmul.msk.f32.vlgmr.msra.gmra.mxu2 %vm223_vm0, %v527_v24 }
  0x39   : > { %843 = vmatmul.msk.f32.vlgmr.msra.gmra.mxu3 %vm223_vm0, %v522_v25  ;;  %847 = vmatmul.msk.f32.vlgmr.msra.gmra.mxu0 %vm223_vm0, %v614_v26 }
  0x40   : > { %836 = vmatmul.msk.f32.gmra.mxu1 %vm223_vm0, %v461_v27  ;;  %840 = vmatmul.msk.f32.gmra.mxu2 %vm223_vm0, %v528_v28  ;;  %v511_v27 = vld [vmem:[#allocation3 + $0x10] sm:$0xff] }
  0x41   : > { %844 = vmatmul.msk.f32.gmra.mxu3 %vm223_vm0, %v523_v29  ;;  %848 = vmatmul.msk.f32.gmra.mxu0 %vm223_vm0, %v615_v30 }
  0x48   : > { %837 = vmatmul.msk.f32.gmra.mxu1 %vm223_vm0, %v462_v31  ;;  %841 = vmatmul.msk.f32.gmra.mxu2 %vm223_vm0, %v529_v32 }
  0x49   : > { %845 = vmatmul.msk.f32.gmra.mxu3 %vm223_vm0, %v524_v33  ;;  %849 = vmatmul.msk.f32.gmra.mxu0 %vm223_vm0, %v616_v34 }
  0x50   : > { %838 = vmatmul.msk.f32.gmra.mxu1 %vm223_vm0, %v463_v35  ;;  %842 = vmatmul.msk.f32.gmra.mxu2 %vm223_vm0, %v530_v36 }
  0x51   : > { %846 = vmatmul.msk.f32.gmra.mxu3 %vm223_vm0, %v525_v37  ;;  %850 = vmatmul.msk.f32.gmra.mxu0 %vm223_vm0, %v617_v38 }
  0x8d   : > { %v256_v40 = vpop.f32.mrf.mxu1 }
  0x8e   : > { %v253_v41 = vpop.f32.mrf.mxu0 }
  0x93   : > { %v259_v42 = vpop.f32.mrf.mxu2 }
  0x94   : > { %v262_v43 = vpop.f32.mrf.mxu3 }
  0x95   : > { %v294_v44 = vpop.f32.mrf.mxu1 }
  0x96   : > { %v448_v45 = vpop.f32.mrf.mxu0  ;;  %v295_v46 = vadd.f32 %v294_v44, %v253_v41 }
  0x9b   : > { %v340_v47 = vpop.f32.mrf.mxu2 }
  0x9c   : > { %v352_v49 = vadd.f32 %v340_v47, %v295_v46  ;;  %v407_v50 = vpop.f32.mrf.mxu3 }
  0x9d   : > { %v297_v51 = vpop.f32.mrf.mxu1  ;;  %v449_v13 = vadd.f32 %v448_v45, %v407_v50 }
  0x9e   : > { %v360_v52 = vadd.f32 %v356_v48, %v352_v49  ;;  %v451_v53 = vpop.f32.mrf.mxu0  ;;  %v298_v57 = vadd.f32 %v297_v51, %v256_v40  ;;  %v512_v40 = vld [vmem:[#allocation3 + $0x20] sm:$0xff] }
  0xa0   : > { %364 = vst.msk [vmem:[#allocation2] sm:$0xff] %vm195_vm1, %v360_v52 }
  0xa3   : > { %v343_v59 = vpop.f32.mrf.mxu2 }
  0xa4   : > { %v353_v61 = vadd.f32 %v343_v59, %v298_v57  ;;  %v410_v62 = vpop.f32.mrf.mxu3 }
  0xa5   : > { %v300_v63 = vpop.f32.mrf.mxu1  ;;  %v452_v23 = vadd.f32 %v451_v53, %v410_v62 }
  0xa6   : > { %v361_v0 = vadd.f32 %v357_v60, %v353_v61  ;;  %v454_v1 = vpop.f32.mrf.mxu0  ;;  %v301_v2 = vadd.f32 %v300_v63, %v259_v42 }
  0xa7   : > { %v664_v31 = vld [vmem:[#allocation2 + $0x1] sm:$0xff] }
  0xa8   : > { %365 = vst.msk [vmem:[#allocation2 + $0x10] sm:$0xff] %vm195_vm1, %v361_v0 }
  0xab   : > { %v346_v3 = vpop.f32.mrf.mxu2 }
  0xac   : > { %v354_v5 = vadd.f32 %v346_v3, %v301_v2  ;;  %v413_v6 = vpop.f32.mrf.mxu3 }
  0xad   : > { %v303_v7 = vpop.f32.mrf.mxu1  ;;  %v455_v36 = vadd.f32 %v454_v1, %v413_v6 }
  0xae   : > { %v362_v8 = vadd.f32 %v358_v4, %v354_v5  ;;  %v457_v9 = vpop.f32.mrf.mxu0  ;;  %v304_v10 = vadd.f32 %v303_v7, %v262_v43 }
  0xaf   : > { %v665_v44 = vld [vmem:[#allocation2 + $0x11] sm:$0xff] }
  0xb0   : > { %366 = vst.msk [vmem:[#allocation2 + $0x20] sm:$0xff] %vm195_vm1, %v362_v8 }
  0xb3   : > { %v349_v11 = vpop.f32.mrf.mxu2 }
  0xb4   : > { %v355_v14 = vadd.f32 %v349_v11, %v304_v10  ;;  %v416_v15 = vpop.f32.mrf.mxu3 }
  0xb5   : > { %v494_v16 = vpop.f32.mrf.mxu1  ;;  %v458_v51 = vadd.f32 %v457_v9, %v416_v15 }
  0xb6   : > { %v363_v18 = vadd.f32 %v359_v12, %v355_v14  ;;  %v506_v19 = vadd.f32 %v494_v16, %v449_v13  ;;  %v648_v20 = vpop.f32.mrf.mxu0 }
  0xb7   : > { %v666_v59 = vld [vmem:[#allocation2 + $0x21] sm:$0xff] }
  0xb8   : > { %367 = vst.msk [vmem:[#allocation2 + $0x30] sm:$0xff] %vm195_vm1, %v363_v18  ;;  %v514_v21 = vadd.f32 %v510_v17, %v506_v19 }
  0xba   : > { %518 = vst.msk [vmem:[#allocation3] sm:$0xff] %vm195_vm1, %v514_v21 }
  0xbb   : > { %v561_v22 = vpop.f32.mrf.mxu2 }
  0xbc   : > { %v602_v24 = vpop.f32.mrf.mxu3 }
  0xbd   : > { %v603_v25 = vadd.f32 %v602_v24, %v561_v22  ;;  %v497_v26 = vpop.f32.mrf.mxu1 }
  0xbe   : > { %v507_v28 = vadd.f32 %v497_v26, %v452_v23  ;;  %v651_v32 = vpop.f32.mrf.mxu0 }
  0xbf   : > { %v660_v29 = vadd.f32 %v648_v20, %v603_v25  ;;  %v667_v5 = vld [vmem:[#allocation2 + $0x31] sm:$0xff] }
  0xc0   : > { %v515_v30 = vadd.f32 %v511_v27, %v507_v28 }
  0xc1   : > { %v692_v33 = vld [vmem:[#allocation3] sm:$0xff]  ;;  %v668_v34 = vadd.f32 %v664_v31, %v660_v29 }
  0xc2   : > { %700 = vst.msk [vmem:[%s1017_s28] sm:$0xff] %vm195_vm1, %v692_v33 }
  0xc3   : > { %519 = vst.msk [vmem:[#allocation3 + $0x10] sm:$0xff] %vm195_vm1, %v515_v30  ;;  %v564_v35 = vpop.f32.mrf.mxu2 }
  0xc4   : > { %672 = vst.msk [vmem:[#allocation2 + $0x1] sm:$0xff] %vm195_vm1, %v668_v34  ;;  %v605_v37 = vpop.f32.mrf.mxu3 }
  0xc5   : > { %v606_v38 = vadd.f32 %v605_v37, %v564_v35  ;;  %v500_v39 = vpop.f32.mrf.mxu1 }
  0xc6   : > { %v508_v41 = vadd.f32 %v500_v39, %v455_v36  ;;  %v654_v47 = vpop.f32.mrf.mxu0 }
  0xc7   : > { %v661_v42 = vadd.f32 %v651_v32, %v606_v38 }
  0xc8   : > { %v516_v43 = vadd.f32 %v512_v40, %v508_v41 }
  0xc9   : > { %v669_v46 = vadd.f32 %v665_v44, %v661_v42 }
  0xca   : > { %v694_v45 = vld [vmem:[#allocation3 + $0x10] sm:$0xff]  ;;  %520 = vst.msk [vmem:[#allocation3 + $0x20] sm:$0xff] %vm195_vm1, %v516_v43 }
  0xcb   : > { %702 = vst.msk [vmem:[%s1017_s28 + $0x10] sm:$0xff] %vm195_vm1, %v694_v45  ;;  %v676_v48 = vld [vmem:[#allocation2] sm:$0xff]  ;;  %v677_v49 = vld [vmem:[#allocation2 + $0x8] sm:$0x1]  ;;  %v567_v50 = vpop.f32.mrf.mxu2 }
  0xcc   : > { %684 = vst.msk [vmem:[%s1040_s4] sm:$0xff] %vm195_vm1, %v676_v48  ;;  %v608_v52 = vpop.f32.mrf.mxu3 }
  0xcd   : > { %685 = vst.msk [vmem:[%s1040_s4 + $0x8] sm:$0x1] %vm197_vm2, %v677_v49  ;;  %v609_v53 = vadd.f32 %v608_v52, %v567_v50  ;;  %v503_v54 = vpop.f32.mrf.mxu1 }
  0xce   : > { %673 = vst.msk [vmem:[#allocation2 + $0x11] sm:$0xff] %vm195_vm1, %v669_v46  ;;  %v509_v56 = vadd.f32 %v503_v54, %v458_v51  ;;  %v657_v0 = vpop.f32.mrf.mxu0 }
  0xcf   : > { %v662_v57 = vadd.f32 %v654_v47, %v609_v53 }
  0xd0   : > { %v517_v58 = vadd.f32 %v513_v55, %v509_v56 }
  0xd1   : > { %v696_v60 = vld [vmem:[#allocation3 + $0x20] sm:$0xff]  ;;  %v670_v61 = vadd.f32 %v666_v59, %v662_v57 }
  0xd2   : > { %704 = vst.msk [vmem:[%s1017_s28 + $0x20] sm:$0xff] %vm195_vm1, %v696_v60 }
  0xd3   : > { %521 = vst.msk [vmem:[#allocation3 + $0x30] sm:$0xff] %vm195_vm1, %v517_v58  ;;  %v570_v62 = vpop.f32.mrf.mxu2 }
  0xd4   : > { %674 = vst.msk [vmem:[#allocation2 + $0x21] sm:$0xff] %vm195_vm1, %v670_v61  ;;  %v611_v63 = vpop.f32.mrf.mxu3 }
  0xd5   : > { %v678_v1 = vld [vmem:[#allocation2 + $0x10] sm:$0xff]  ;;  %v679_v2 = vld [vmem:[#allocation2 + $0x18] sm:$0x1]  ;;  %v612_v3 = vadd.f32 %v611_v63, %v570_v62 }
  0xd6   : > { %686 = vst.msk [vmem:[%s1040_s4 + $0x10] sm:$0xff] %vm195_vm1, %v678_v1 }
  0xd7   : > { %687 = vst.msk [vmem:[%s1040_s4 + $0x18] sm:$0x1] %vm197_vm2, %v679_v2  ;;  %v663_v4 = vadd.f32 %v657_v0, %v612_v3 }
  0xd9   : > { %v671_v7 = vadd.f32 %v667_v5, %v663_v4 }
  0xda   : > { %v698_v6 = vld [vmem:[#allocation3 + $0x30] sm:$0xff] }
  0xdb   : > { %706 = vst.msk [vmem:[%s1017_s28 + $0x30] sm:$0xff] %vm195_vm1, %v698_v6  ;;  %v680_v8 = vld [vmem:[#allocation2 + $0x20] sm:$0xff]  ;;  %v681_v9 = vld [vmem:[#allocation2 + $0x28] sm:$0x1] }
  0xdc   : > { %688 = vst.msk [vmem:[%s1040_s4 + $0x20] sm:$0xff] %vm195_vm1, %v680_v8 }
  0xdd   : > { %689 = vst.msk [vmem:[%s1040_s4 + $0x28] sm:$0x1] %vm197_vm2, %v681_v9 }
  0xde   : > { %675 = vst.msk [vmem:[#allocation2 + $0x31] sm:$0xff] %vm195_vm1, %v671_v7 }
  0xe5   : > { %v682_v10 = vld [vmem:[#allocation2 + $0x30] sm:$0xff]  ;;  %v683_v11 = vld [vmem:[#allocation2 + $0x38] sm:$0x1] }
  0xe6   : > { %690 = vst.msk [vmem:[%s1040_s4 + $0x30] sm:$0xff] %vm195_vm1, %v682_v10 }
  0xe7   : > { %691 = vst.msk [vmem:[%s1040_s4 + $0x38] sm:$0x1] %vm197_vm2, %v683_v11 }
  0xe8 PF: > { %s14_s12 = sadd.s32 1, %s874_s12  }
  0xe9   : > { %p11_p4 = scmp.ge.s32.totalorder %s14_s12, 4  }
  0xeb   :  { %13 = sbr.rel (!%p11_p4) target bundleno = 1 (0x1), region = 70 }

</bundles_post_ra>
